<compile_context>
chip_gen: v5e
topology: v5e:2x2
jax: 0.10.0
libtpu: 0.0.40
codegen_flags: <defaults>
</compile_context>

<pallas_src>
import functools

import numpy as np

import jax
import jax.numpy as jnp
from jax.experimental import pallas as pl
from jax.experimental.pallas import tpu as pltpu


_VMEM_BLOCK_BUDGET = 8 * 1024 * 1024   # target block bytes per pipeline stage
_VMEM_LIMIT_BYTES = 48 * 1024 * 1024   # scoped VMEM limit (fits v5e/v6e/v7x)
_FUSED_P_MAX_BYTES = 2 * 1024 * 1024   # max size of the fused pooling matrix


def _round_up(x, m):
    return (x + m - 1) // m * m


def _choose_bt(m, row_bytes, align):
    """Planes per block: fill ~_VMEM_BLOCK_BUDGET per pipeline stage and keep
    the grid length >= 2 when there is enough work (megacore / pipelining)."""
    bt = max(_VMEM_BLOCK_BUDGET // max(row_bytes, 1), align)
    if m >= 2 * align and m > 8:
        bt = min(bt, _round_up(pl.cdiv(m, 2), align))
    bt = min(bt, _round_up(m, align))
    return max(_round_up(bt, align), align)


def _window_matrix(in_size, out_size, k, s, p):
    """A[o, i] = 1.0 iff input index i falls inside (clipped) pooling window o."""
    i = np.arange(in_size)[None, :]
    start = s * np.arange(out_size)[:, None] - p
    return ((i >= start) & (i < start + k)).astype(np.float32)


# ---------------------------------------------------------------------------
# Path A (default): fused pool as one MXU matmul  (bt, H*W) @ P (H*W, Ho*Wo).
# ---------------------------------------------------------------------------

def _fused_pool_kernel(p_ref, r_ref, i_ref, or_ref, oi_ref, *, scale):
    p = p_ref[...]  # (H*W, Ho*Wo) bf16 0/1 window-membership matrix

    def pool(x):
        # f32-accurate pooling on the (otherwise idle) MXU via a 3-term bf16
        # split of the input.  P is 0/1 so all bf16 products are exact and the
        # MXU accumulates in f32.
        x1 = x.astype(jnp.bfloat16)
        r1 = x - x1.astype(jnp.float32)
        x2 = r1.astype(jnp.bfloat16)
        x3 = (r1 - x2.astype(jnp.float32)).astype(jnp.bfloat16)
        acc = jnp.dot(x1, p, preferred_element_type=jnp.float32)
        acc = acc + jnp.dot(x2, p, preferred_element_type=jnp.float32)
        acc = acc + jnp.dot(x3, p, preferred_element_type=jnp.float32)
        return acc * scale

    or_ref[...] = pool(r_ref[...])
    oi_ref[...] = pool(i_ref[...])


def _pool_fused(r2, i2, pool_mat, n_out, scale):
    m, hw = r2.shape
    row_bytes = 4 * 2 * (_round_up(hw, 128) + _round_up(n_out, 128))
    bt = _choose_bt(m, row_bytes, align=8)
    mp = _round_up(m, bt)
    if mp != m:
        r2 = jnp.pad(r2, ((0, mp - m), (0, 0)))
        i2 = jnp.pad(i2, ((0, mp - m), (0, 0)))
    out_sds = jax.ShapeDtypeStruct((mp, n_out), jnp.float32)
    kernel = functools.partial(_fused_pool_kernel, scale=scale)
    pr, pi = pl.pallas_call(
        kernel,
        out_shape=(out_sds, out_sds),
        grid_spec=pltpu.PrefetchScalarGridSpec(
            num_scalar_prefetch=0,
            grid=(mp // bt,),
            in_specs=[
                pl.BlockSpec((hw, n_out), lambda i: (0, 0)),   # pooling matrix
                pl.BlockSpec((bt, hw), lambda i: (i, 0)),      # real planes
                pl.BlockSpec((bt, hw), lambda i: (i, 0)),      # imag planes
            ],
            out_specs=(
                pl.BlockSpec((bt, n_out), lambda i: (i, 0)),
                pl.BlockSpec((bt, n_out), lambda i: (i, 0)),
            ),
        ),
        compiler_params=pltpu.CompilerParams(
            dimension_semantics=("parallel",),
            vmem_limit_bytes=_VMEM_LIMIT_BYTES,
        ),
    )(pool_mat, r2, i2)
    return pr[:m], pi[:m]


# ---------------------------------------------------------------------------
# Path B (large spatial maps): separable strided-slice accumulation.
# ---------------------------------------------------------------------------

def _sliced_pool_kernel(r_ref, i_ref, or_ref, oi_ref, *, kh, kw, sh, sw, ho, wo,
                        scale):
    def pool(x):
        acc = jnp.zeros((x.shape[0], ho, wo), jnp.float32)
        for di in range(kh):
            for dj in range(kw):
                acc = acc + x[:, di:di + sh * ho:sh, dj:dj + sw * wo:sw]
        return acc * scale

    or_ref[...] = pool(r_ref[...])
    oi_ref[...] = pool(i_ref[...])


def _pool_sliced(r, i, kernel_size, stride, padding, ho, wo):
    kh, kw = kernel_size
    sh, sw = stride
    ph, pw = padding
    if ph or pw:
        # count_include_pad=True: zero-pad and keep the kh*kw divisor.  Under
        # jit this pad fuses into the real/imag extraction copy upstream.
        pad = ((0, 0), (ph, ph), (pw, pw))
        r = jnp.pad(r, pad)
        i = jnp.pad(i, pad)
    m, hp, wp = r.shape
    row_bytes = 4 * 2 * (_round_up(hp, 8) * _round_up(wp, 128)
                         + _round_up(ho, 8) * _round_up(wo, 128))
    bt = _choose_bt(m, row_bytes, align=1)
    mp = _round_up(m, bt)
    if mp != m:
        pad = ((0, mp - m), (0, 0), (0, 0))
        r = jnp.pad(r, pad)
        i = jnp.pad(i, pad)
    out_sds = jax.ShapeDtypeStruct((mp, ho, wo), jnp.float32)
    kernel = functools.partial(_sliced_pool_kernel, kh=kh, kw=kw, sh=sh, sw=sw,
                               ho=ho, wo=wo, scale=1.0 / float(kh * kw))
    pr, pi = pl.pallas_call(
        kernel,
        out_shape=(out_sds, out_sds),
        grid_spec=pltpu.PrefetchScalarGridSpec(
            num_scalar_prefetch=0,
            grid=(mp // bt,),
            in_specs=[
                pl.BlockSpec((bt, hp, wp), lambda i: (i, 0, 0)),
                pl.BlockSpec((bt, hp, wp), lambda i: (i, 0, 0)),
            ],
            out_specs=(
                pl.BlockSpec((bt, ho, wo), lambda i: (i, 0, 0)),
                pl.BlockSpec((bt, ho, wo), lambda i: (i, 0, 0)),
            ),
        ),
        compiler_params=pltpu.CompilerParams(
            dimension_semantics=("parallel",),
            vmem_limit_bytes=_VMEM_LIMIT_BYTES,
        ),
    )(r, i)
    return pr[:m].reshape(m, ho * wo), pi[:m].reshape(m, ho * wo)


# ---------------------------------------------------------------------------
# Public wrapper (matches the PyTorch forward semantics).
# ---------------------------------------------------------------------------

def complex_avg_pool2d(x, kernel_size, stride=None, padding=0, ceil_mode=False,
                       count_include_pad=True, divisor_override=None):
    """Applies avg_pool2d independently to real/imag parts of a complex NCHW x."""
    if isinstance(kernel_size, int):
        kernel_size = (kernel_size, kernel_size)
    if stride is None:
        stride = kernel_size
    if isinstance(stride, int):
        stride = (stride, stride)
    if isinstance(padding, int):
        padding = (padding, padding)
    # TODO(synk): ceil_mode=True, count_include_pad=False and divisor_override
    # are not implemented (PyTorch defaults reproduced exactly).
    assert not ceil_mode and count_include_pad and divisor_override is None

    kh, kw = kernel_size
    sh, sw = stride
    ph, pw = padding
    n, c, h, w = x.shape
    m = n * c
    ho = (h + 2 * ph - kh) // sh + 1
    wo = (w + 2 * pw - kw) // sw + 1
    scale = 1.0 / float(kh * kw)

    # Split the complex input once (no stack; reshape/pad fuse into this copy
    # under jit) and recombine only the pooled output.
    re = jnp.real(x).astype(jnp.float32)
    im = jnp.imag(x).astype(jnp.float32)

    p_bytes = _round_up(h * w, 8) * _round_up(ho * wo, 128) * 2  # bf16 matrix
    if p_bytes <= _FUSED_P_MAX_BYTES:
        # Whole 2-D pool as one MXU matmul against a static 0/1 window matrix;
        # zero padding is folded into the matrix (exact for count_include_pad).
        ah = _window_matrix(h, ho, kh, sh, ph)          # (ho, h)
        aw = _window_matrix(w, wo, kw, sw, pw)          # (wo, w)
        pmat = np.einsum("oh,qw->hwoq", ah, aw).reshape(h * w, ho * wo)
        pmat = jnp.asarray(pmat, jnp.bfloat16)
        pr, pi = _pool_fused(re.reshape(m, h * w), im.reshape(m, h * w),
                             pmat, ho * wo, scale)
    else:
        # Very large spatial maps: separable strided-slice kernel instead of a
        # huge fused pooling matrix.
        pr, pi = _pool_sliced(re.reshape(m, h, w), im.reshape(m, h, w),
                              (kh, kw), (sh, sw), (ph, pw), ho, wo)

    out = jax.lax.complex(pr, pi).reshape(n, c, ho, wo)
    return out.astype(jnp.complex64)


class ComplexAvgPool2d:
    """Forward-only equivalent of the PyTorch ComplexAvgPool2d module."""

    def __init__(self, kernel_size, stride=None, padding=0, ceil_mode=False,
                 count_include_pad=True, divisor_override=None):
        self.kernel_size = kernel_size
        self.stride = stride if stride is not None else kernel_size
        self.padding = padding
        self.ceil_mode = ceil_mode
        self.count_include_pad = count_include_pad
        self.divisor_override = divisor_override
        # Jit so the real/imag extraction, reshapes/pads and the final complex
        # recombine fuse around the pallas_call (no extra HBM round trips).
        self._fn = jax.jit(functools.partial(
            complex_avg_pool2d,
            kernel_size=self.kernel_size, stride=self.stride,
            padding=self.padding, ceil_mode=self.ceil_mode,
            count_include_pad=self.count_include_pad,
            divisor_override=self.divisor_override))

    def __call__(self, x):
        return self._fn(x)


def _reference(x, kernel_size, stride, padding=(0, 0)):
    """Pure-JAX reference (count_include_pad=True, ceil_mode=False)."""
    kh, kw = kernel_size
    sh, sw = stride
    ph, pw = padding

    def pool(v):
        s = jax.lax.reduce_window(
            v, 0.0, jax.lax.add,
            window_dimensions=(1, 1, kh, kw),
            window_strides=(1, 1, sh, sw),
            padding=((0, 0), (0, 0), (ph, ph), (pw, pw)),
        )
        return s / (kh * kw)

    return pool(jnp.real(x)) + 1j * pool(jnp.imag(x))


if __name__ == "__main__":
    key = jax.random.PRNGKey(0)
    ks = jax.random.split(key, 4)

    def make_complex(shape, k1, k2):
        re = jax.random.normal(k1, shape, dtype=jnp.float32)
        im = jax.random.normal(k2, shape, dtype=jnp.float32)
        return (re + 1j * im).astype(jnp.complex64)

    # 1) Module default config (stride = kernel_size) -> fused MXU path.
    x = make_complex((2, 4, 16, 16), ks[0], ks[1])
    out = jax.block_until_ready(ComplexAvgPool2d(kernel_size=2)(x))
    ref = _reference(x, (2, 2), (2, 2)).astype(jnp.complex64)
    assert out.shape == (2, 4, 8, 8), out.shape
    assert out.dtype == jnp.complex64, out.dtype
    assert jnp.allclose(out, ref, atol=1e-5, rtol=1e-5)

    # 2) Overlapping windows + zero padding (folded into the pooling matrix).
    out2 = jax.block_until_ready(
        ComplexAvgPool2d(kernel_size=3, stride=2, padding=1)(x))
    ref2 = _reference(x, (3, 3), (2, 2), (1, 1)).astype(jnp.complex64)
    assert out2.shape == (2, 4, 8, 8), out2.shape
    assert jnp.allclose(out2, ref2, atol=1e-5, rtol=1e-5)

    # 3) Large spatial map -> separable strided-slice fallback path.
    x3 = make_complex((1, 2, 48, 48), ks[2], ks[3])
    out3 = jax.block_until_ready(ComplexAvgPool2d(kernel_size=2)(x3))
    ref3 = _reference(x3, (2, 2), (2, 2)).astype(jnp.complex64)
    assert out3.shape == (1, 2, 24, 24), out3.shape
    assert jnp.allclose(out3, ref3, atol=1e-5, rtol=1e-5)

    print("KERNEL_OK")
</pallas_src>

<mosaic_0001>
module attributes {stable_mosaic.version = 11 : i64} {
  func.func @_fused_pool_kernel(%arg0: i32, %arg1: memref<256x64xbf16, #tpu.memory_space<vmem>>, %arg2: memref<8x256xf32, #tpu.memory_space<vmem>>, %arg3: memref<8x256xf32, #tpu.memory_space<vmem>>, %arg4: memref<8x64xf32, #tpu.memory_space<vmem>>, %arg5: memref<8x64xf32, #tpu.memory_space<vmem>>) attributes {dimension_semantics = [#tpu.dimension_semantics<parallel>], iteration_bounds = array<i64: 1>, scalar_prefetch = 0 : i64, scratch_operands = 0 : i64, tpu.core_type = #tpu.core_type<tc>, window_params = [{pipeline_mode = #tpu.pipeline_mode<synchronous>, transform_indices = @transform_0, window_bounds = array<i64: 256, 64>}, {transform_indices = @transform_1, window_bounds = array<i64: 8, 256>}, {transform_indices = @transform_2, window_bounds = array<i64: 8, 256>}, {transform_indices = @transform_3, window_bounds = array<i64: 8, 64>}, {transform_indices = @transform_4, window_bounds = array<i64: 8, 64>}]} {
    %c0 = arith.constant 0 : index
    %c0_0 = arith.constant 0 : index
    %0 = vector.load %arg1[%c0, %c0_0] : memref<256x64xbf16, #tpu.memory_space<vmem>>, vector<256x64xbf16>
    %c0_1 = arith.constant 0 : index
    %c0_2 = arith.constant 0 : index
    %1 = vector.load %arg2[%c0_1, %c0_2] : memref<8x256xf32, #tpu.memory_space<vmem>>, vector<8x256xf32>
    %2 = arith.truncf %1 : vector<8x256xf32> to vector<8x256xbf16>
    %3 = arith.extf %2 : vector<8x256xbf16> to vector<8x256xf32>
    %4 = arith.subf %1, %3 : vector<8x256xf32>
    %5 = arith.truncf %4 : vector<8x256xf32> to vector<8x256xbf16>
    %6 = arith.extf %5 : vector<8x256xbf16> to vector<8x256xf32>
    %7 = arith.subf %4, %6 : vector<8x256xf32>
    %8 = arith.truncf %7 : vector<8x256xf32> to vector<8x256xbf16>
    %cst = arith.constant dense<0.000000e+00> : vector<8x64xf32>
    %9 = tpu.matmul %2, %0, %cst {dimension_numbers = #tpu.dot_dimension_numbers<[1], [0], [0], [1], [0, 0, 1, 1], [], []>} : vector<8x256xbf16>, vector<256x64xbf16>, vector<8x64xf32> -> vector<8x64xf32>
    %cst_3 = arith.constant dense<0.000000e+00> : vector<8x64xf32>
    %10 = tpu.matmul %5, %0, %cst_3 {dimension_numbers = #tpu.dot_dimension_numbers<[1], [0], [0], [1], [0, 0, 1, 1], [], []>} : vector<8x256xbf16>, vector<256x64xbf16>, vector<8x64xf32> -> vector<8x64xf32>
    %11 = arith.addf %9, %10 : vector<8x64xf32>
    %cst_4 = arith.constant dense<0.000000e+00> : vector<8x64xf32>
    %12 = tpu.matmul %8, %0, %cst_4 {dimension_numbers = #tpu.dot_dimension_numbers<[1], [0], [0], [1], [0, 0, 1, 1], [], []>} : vector<8x256xbf16>, vector<256x64xbf16>, vector<8x64xf32> -> vector<8x64xf32>
    %13 = arith.addf %11, %12 : vector<8x64xf32>
    %cst_5 = arith.constant 2.500000e-01 : f32
    %14 = vector.broadcast %cst_5 : f32 to vector<8x64xf32>
    %15 = arith.mulf %13, %14 : vector<8x64xf32>
    %c0_6 = arith.constant 0 : index
    %c0_7 = arith.constant 0 : index
    %16 = vector.load %arg4[%c0_6, %c0_7] : memref<8x64xf32, #tpu.memory_space<vmem>>, vector<8x64xf32>
    tpu.vector_store %arg4[%c0_6, %c0_7], %15 {strides = array<i32>} : memref<8x64xf32, #tpu.memory_space<vmem>>, vector<8x64xf32>,
    %c0_8 = arith.constant 0 : index
    %c0_9 = arith.constant 0 : index
    %17 = vector.load %arg3[%c0_8, %c0_9] : memref<8x256xf32, #tpu.memory_space<vmem>>, vector<8x256xf32>
    %18 = arith.truncf %17 : vector<8x256xf32> to vector<8x256xbf16>
    %19 = arith.extf %18 : vector<8x256xbf16> to vector<8x256xf32>
    %20 = arith.subf %17, %19 : vector<8x256xf32>
    %21 = arith.truncf %20 : vector<8x256xf32> to vector<8x256xbf16>
    %22 = arith.extf %21 : vector<8x256xbf16> to vector<8x256xf32>
    %23 = arith.subf %20, %22 : vector<8x256xf32>
    %24 = arith.truncf %23 : vector<8x256xf32> to vector<8x256xbf16>
    %cst_10 = arith.constant dense<0.000000e+00> : vector<8x64xf32>
    %25 = tpu.matmul %18, %0, %cst_10 {dimension_numbers = #tpu.dot_dimension_numbers<[1], [0], [0], [1], [0, 0, 1, 1], [], []>} : vector<8x256xbf16>, vector<256x64xbf16>, vector<8x64xf32> -> vector<8x64xf32>
    %cst_11 = arith.constant dense<0.000000e+00> : vector<8x64xf32>
    %26 = tpu.matmul %21, %0, %cst_11 {dimension_numbers = #tpu.dot_dimension_numbers<[1], [0], [0], [1], [0, 0, 1, 1], [], []>} : vector<8x256xbf16>, vector<256x64xbf16>, vector<8x64xf32> -> vector<8x64xf32>
    %27 = arith.addf %25, %26 : vector<8x64xf32>
    %cst_12 = arith.constant dense<0.000000e+00> : vector<8x64xf32>
    %28 = tpu.matmul %24, %0, %cst_12 {dimension_numbers = #tpu.dot_dimension_numbers<[1], [0], [0], [1], [0, 0, 1, 1], [], []>} : vector<8x256xbf16>, vector<256x64xbf16>, vector<8x64xf32> -> vector<8x64xf32>
    %29 = arith.addf %27, %28 : vector<8x64xf32>
    %cst_13 = arith.constant 2.500000e-01 : f32
    %30 = vector.broadcast %cst_13 : f32 to vector<8x64xf32>
    %31 = arith.mulf %29, %30 : vector<8x64xf32>
    %c0_14 = arith.constant 0 : index
    %c0_15 = arith.constant 0 : index
    %32 = vector.load %arg5[%c0_14, %c0_15] : memref<8x64xf32, #tpu.memory_space<vmem>>, vector<8x64xf32>
    tpu.vector_store %arg5[%c0_14, %c0_15], %31 {strides = array<i32>} : memref<8x64xf32, #tpu.memory_space<vmem>>, vector<8x64xf32>,
    return
  }
  func.func @transform_0(%arg0: i32) -> (i32, i32) {
    %c0_i32 = arith.constant 0 : i32
    %c0_i32_0 = arith.constant 0 : i32
    %c0_i32_1 = arith.constant 0 : i32
    return %c0_i32, %c0_i32_0 : i32, i32
  }
  func.func @transform_1(%arg0: i32) -> (i32, i32) {
    %c0_i32 = arith.constant 0 : i32
    %c0_i32_0 = arith.constant 0 : i32
    return %arg0, %c0_i32 : i32, i32
  }
  func.func @transform_2(%arg0: i32) -> (i32, i32) {
    %c0_i32 = arith.constant 0 : i32
    %c0_i32_0 = arith.constant 0 : i32
    return %arg0, %c0_i32 : i32, i32
  }
  func.func @transform_3(%arg0: i32) -> (i32, i32) {
    %c0_i32 = arith.constant 0 : i32
    %c0_i32_0 = arith.constant 0 : i32
    return %arg0, %c0_i32 : i32, i32
  }
  func.func @transform_4(%arg0: i32) -> (i32, i32) {
    %c0_i32 = arith.constant 0 : i32
    %c0_i32_0 = arith.constant 0 : i32
    return %arg0, %c0_i32 : i32, i32
  }
}

</mosaic_0001>

<bundles_post_ra>
// kernel: custom-call.1
= control target key start
LH: loop header
LB: loop body
LE: loop exit
PB: predicated region body
PF: predicated region fallthrough
CT: control target
= control target key end

     0   :  { %s56_s0 = inlined_call_operand.hbm [shape: c64[2,4,16,16], index: 0, kind: input, shape index: {}]   ;;  %s57_s1 = inlined_call_operand.vmem [shape: f32[2,4,16,16], index: 1, kind: output, shape index: {}]  }
   0x1   :  { %s2_s8 = scalar_lea.hbm %s56_s0, 128 }
   0x2   :  { %3 = vsyncpa [#allocation0], 0  ;;  %s5_s9 = sshll.u32 %s2_s8, 4  ;;  %s7_s12 = sshll.u32 %s57_s1, 4  ;;  %s6_s9 = int_to_ptr.hbm [resolvable:$true] %s5_s9  ;;  %s8_s12 = int_to_ptr.vmem [resolvable:$true] %s7_s12 }
   0x3   :  { %10 = dma.hbm_to_vmem [thread:$0]  %s6_s9, 2048, %s8_s12, [#allocation0] }
   0x4   :  { %38 = dma.done.wait [#allocation0], 2048  }
   0x5   :  { %39 = vsyncadd [#allocation0], 4294965248 }
   0x6   :  { %13 = vsyncpa [#allocation0], 1 }

// kernel: custom-call
= control target key start
LH: loop header
LB: loop body
LE: loop exit
PB: predicated region body
PF: predicated region fallthrough
CT: control target
= control target key end

     0   :  { %2 = vsyncpa [#allocation0], 0  ;;  %s55_s0 = inlined_call_operand.hbm [shape: c64[2,4,16,16], index: 0, kind: input, shape index: {}]   ;;  %s56_s1 = inlined_call_operand.vmem [shape: f32[2,4,16,16], index: 1, kind: output, shape index: {}]  }
   0x1   :  { %s4_s8 = sshll.u32 %s55_s0, 4  ;;  %s6_s11 = sshll.u32 %s56_s1, 4  ;;  %s5_s8 = int_to_ptr.hbm [resolvable:$true] %s4_s8  ;;  %s7_s11 = int_to_ptr.vmem [resolvable:$true] %s6_s11 }
   0x2   :  { %9 = dma.hbm_to_vmem [thread:$0]  %s5_s8, 2048, %s7_s11, [#allocation0] }
   0x3   :  { %37 = dma.done.wait [#allocation0], 2048  }
   0x4   :  { %38 = vsyncadd [#allocation0], 4294965248 }
   0x5   :  { %12 = vsyncpa [#allocation0], 1 }

// kernel: custom-call.2
= control target key start
LH: loop header
LB: loop body
LE: loop exit
PB: predicated region body
PF: predicated region fallthrough
CT: control target
= control target key end

     0   :  { %s105_s0 = inlined_call_operand.vmem [shape: f32[2,4,8,8], index: 0, kind: input, shape index: {}]   ;;  %s106_s1 = inlined_call_operand.vmem [shape: f32[2,4,8,8], index: 1, kind: input, shape index: {}]   ;;  %s107_s2 = inlined_call_operand.hbm [shape: c64[2,4,8,8], index: 2, kind: output, shape index: {}]  }
   0x1   :  { %s3_s11 = scalar_lea.hbm %s107_s2, 64 }
   0x2   :  { %4 = vsyncpa [#allocation0], 0  ;;  %s6_s14 = sshll.u32 %s105_s0, 4  ;;  %s8_s17 = sshll.u32 %s107_s2, 4  ;;  %s7_s14 = int_to_ptr.vmem [resolvable:$true] %s6_s14  ;;  %s9_s17 = int_to_ptr.hbm [resolvable:$true] %s8_s17 }
   0x3   :  { %11 = dma.vmem_to_hbm [thread:$0]  %s7_s14, 1024, %s9_s17, [#allocation0] }
   0x4   :  { %74 = dma.done.wait [#allocation0], 1024  }
   0x5   :  { %75 = vsyncadd [#allocation0], 4294966272 }
   0x6   :  { %14 = vsyncpa [#allocation0], 1 }
   0x7   :  { %15 = vsyncpa [#allocation1], 0  ;;  %s17_s20 = sshll.u32 %s106_s1, 4  ;;  %s19_s21 = sshll.u32 %s3_s11, 4  ;;  %s18_s20 = int_to_ptr.vmem [resolvable:$true] %s17_s20  ;;  %s20_s21 = int_to_ptr.hbm [resolvable:$true] %s19_s21 }
   0x8   :  { %22 = dma.vmem_to_hbm [thread:$0]  %s18_s20, 1024, %s20_s21, [#allocation1] }
   0x9   :  { %76 = dma.done.wait [#allocation1], 1024  }
   0xa   :  { %77 = vsyncadd [#allocation1], 4294966272 }
   0xb   :  { %25 = vsyncpa [#allocation1], 1 }

// kernel: complex_avg_pool2d.1
= control target key start
LH: loop header
LB: loop body
LE: loop exit
PB: predicated region body
PF: predicated region fallthrough
CT: control target
= control target key end

     0   :  { %vm252_vm0 = vcmask 523264   ;;  %s692_s0 = inlined_call_operand.vmem [shape: bf16[256,64], index: 0, kind: input, shape index: {}]   ;;  %s693_s1 = inlined_call_operand.vmem [shape: f32[8,256], index: 1, kind: input, shape index: {}]   ;;  %s694_s2 = inlined_call_operand.vmem [shape: f32[8,256], index: 2, kind: input, shape index: {}]   ;;  %s695_s3 = inlined_call_operand.vmem [shape: f32[8,64], index: 3, kind: output, shape index: {0}]   ;;  %s696_s4 = inlined_call_operand.vmem [shape: f32[8,64], index: 4, kind: output, shape index: {1}]  }
   0x1   :  { %v479_v0 = vld [vmem:[%s692_s0 + $0x38] sm:$0xff]  ;;  %v491_v2 = vld [vmem:[%s692_s0 + $0x30] sm:$0xff]  ;;  %v505_v4 = vld [vmem:[%s692_s0 + $0x28] sm:$0xff] }
   0x2   :  { %v484_v1 = vld [vmem:[%s692_s0 + $0x78] sm:$0xff]  ;;  %165 = vmatpush.bf16.msra.mxu0 %v479_v0  ;;  %v496_v3 = vld [vmem:[%s692_s0 + $0x70] sm:$0xff]  ;;  %198 = vmatpush.bf16.msra.mxu2 %v479_v0  ;;  %v510_v5 = vld [vmem:[%s692_s0 + $0x68] sm:$0xff] }
   0x3   :  { %178 = vmatpush.bf16.msra.mxu1 %v484_v1  ;;  %211 = vmatpush.bf16.msra.mxu3 %v484_v1  ;;  %v48_v6 = vld [vmem:[%s693_s1] sm:$0xff]  ;;  %v49_v7 = vld [vmem:[%s693_s1 + $0x8] sm:$0xff]  ;;  %v539_v11 = vld [vmem:[%s692_s0 + $0x18] sm:$0xff] }
   0x4   :  { %v525_v8 = vld [vmem:[%s692_s0 + $0x20] sm:$0xff]  ;;  %v50_v10 = vpack.c.bf16 %v49_v7, %v48_v6  ;;  %v544_v12 = vld [vmem:[%s692_s0 + $0x58] sm:$0xff]  ;;  %v553_v15 = vld [vmem:[%s692_s0 + $0x10] sm:$0xff] }
   0x5   :  { %v530_v9 = vld [vmem:[%s692_s0 + $0x60] sm:$0xff]  ;;  %v558_v16 = vld [vmem:[%s692_s0 + $0x50] sm:$0xff]  ;;  %v571_v19 = vld [vmem:[%s692_s0 + $0x8] sm:$0xff] }
   0x6   :  { %166 = vmatpush.bf16.msra.mxu0 %v491_v2  ;;  %199 = vmatpush.bf16.msra.mxu2 %v491_v2  ;;  %v51_v13 = vunpack.c.l.bf16 %v50_v10  ;;  %v52_v14 = vunpack.c.h.bf16 %v50_v10  ;;  %v576_v20 = vld [vmem:[%s692_s0 + $0x48] sm:$0xff]  ;;  %v589_v22 = vld [vmem:[%s692_s0] sm:$0xff]  ;;  %v192_v26 = vunpack.c.l.b16 %v50_v10  ;;  %v193_v27 = vunpack.c.h.b16 %v50_v10 }
   0x7   :  { %179 = vmatpush.bf16.msra.mxu1 %v496_v3  ;;  %212 = vmatpush.bf16.msra.mxu3 %v496_v3  ;;  %v594_v23 = vld [vmem:[%s692_s0 + $0x40] sm:$0xff]  ;;  %v255_v33 = vld [vmem:[%s694_s2 + $0x8] sm:$0xff] }
   0x8   :  { %v560_v17 = vsub.f32 %v48_v6, %v51_v13  ;;  %v562_v18 = vsub.f32 %v49_v7, %v52_v14  ;;  %v194_v30 = vpack.c.b16 %v192_v26, %v192_v26  ;;  %v195_v31 = vpack.c.b16 %v193_v27, %v193_v27  ;;  %v254_v32 = vld [vmem:[%s694_s2] sm:$0xff] }
   0x9   :  { %v622_v34 = vpack.c.bf16 %v255_v33, %v254_v32 }
   0xa   :  { %167 = vmatpush.bf16.msra.mxu0 %v505_v4  ;;  %200 = vmatpush.bf16.msra.mxu2 %v505_v4  ;;  %v580_v21 = vpack.c.bf16 %v562_v18, %v560_v17 }
   0xb   :  { %180 = vmatpush.bf16.msra.mxu1 %v510_v5  ;;  %213 = vmatpush.bf16.msra.mxu3 %v510_v5  ;;  %v257_v35 = vunpack.c.l.bf16 %v622_v34  ;;  %v258_v36 = vunpack.c.h.bf16 %v622_v34  ;;  %v302_v52 = vunpack.c.l.b16 %v622_v34  ;;  %v303_v53 = vunpack.c.h.b16 %v622_v34 }
   0xc   :  { %v63_v24 = vunpack.c.l.b16 %v580_v21  ;;  %v64_v25 = vunpack.c.h.b16 %v580_v21  ;;  %v56_v39 = vunpack.c.l.bf16 %v580_v21  ;;  %v57_v40 = vunpack.c.h.bf16 %v580_v21 }
   0xd   :  { %v259_v37 = vsub.f32 %v254_v32, %v257_v35  ;;  %v260_v38 = vsub.f32 %v255_v33, %v258_v36  ;;  %v304_v56 = vpack.c.b16 %v302_v52, %v302_v52  ;;  %v305_v57 = vpack.c.b16 %v303_v53, %v303_v53 }
   0xe   :  { %168 = vmatpush.bf16.msra.mxu0 %v525_v8  ;;  %201 = vmatpush.bf16.msra.mxu2 %v525_v8  ;;  %v65_v28 = vpack.c.b16 %v63_v24, %v63_v24  ;;  %v66_v29 = vpack.c.b16 %v64_v25, %v64_v25  ;;  %v58_v42 = vsub.f32 %v560_v17, %v56_v39 }
   0xf   :  { %181 = vmatpush.bf16.msra.mxu1 %v530_v9  ;;  %214 = vmatpush.bf16.msra.mxu3 %v530_v9  ;;  %v261_v41 = vpack.c.bf16 %v260_v38, %v259_v37  ;;  %v59_v43 = vsub.f32 %v562_v18, %v57_v40 }
  0x10   :  { %v60_v46 = vpack.c.bf16 %v58_v42, %v58_v42 }
  0x11   :  { %v269_v44 = vunpack.c.l.b16 %v261_v41  ;;  %v270_v45 = vunpack.c.h.b16 %v261_v41  ;;  %v61_v47 = vpack.c.bf16 %v59_v43, %v59_v43  ;;  %v262_v50 = vunpack.c.l.bf16 %v261_v41 }
  0x12   :  { %169 = vmatpush.bf16.msra.mxu0 %v539_v11  ;;  %202 = vmatpush.bf16.msra.mxu2 %v539_v11  ;;  %v263_v51 = vunpack.c.h.bf16 %v261_v41 }
  0x13   :  { %182 = vmatpush.bf16.msra.mxu1 %v544_v12  ;;  %215 = vmatpush.bf16.msra.mxu3 %v544_v12  ;;  %v271_v48 = vpack.c.b16 %v269_v44, %v269_v44  ;;  %v272_v49 = vpack.c.b16 %v270_v45, %v270_v45  ;;  %v264_v54 = vsub.f32 %v259_v37, %v262_v50 }
  0x14   :  { %v265_v55 = vsub.f32 %v260_v38, %v263_v51 }
  0x15   :  { %v266_v58 = vpack.c.bf16 %v264_v54, %v264_v54 }
  0x16   :  { %170 = vmatpush.bf16.msra.mxu0 %v553_v15  ;;  %203 = vmatpush.bf16.msra.mxu2 %v553_v15  ;;  %v267_v59 = vpack.c.bf16 %v265_v55, %v265_v55 }
  0x17   :  { %183 = vmatpush.bf16.msra.mxu1 %v558_v16  ;;  %216 = vmatpush.bf16.msra.mxu3 %v558_v16 }
  0x1a   :  { %171 = vmatpush.bf16.msra.mxu0 %v571_v19  ;;  %204 = vmatpush.bf16.msra.mxu2 %v571_v19 }
  0x1b   :  { %184 = vmatpush.bf16.msra.mxu1 %v576_v20  ;;  %217 = vmatpush.bf16.msra.mxu3 %v576_v20 }
  0x1e   :  { %172 = vmatpush.bf16.msra.mxu0 %v589_v22  ;;  %205 = vmatpush.bf16.msra.mxu2 %v589_v22 }
  0x1f   :  { %185 = vmatpush.bf16.msra.mxu1 %v594_v23  ;;  %218 = vmatpush.bf16.msra.mxu3 %v594_v23 }
  0x21   :  { %173 = vmatmul.bf16.vlgmr.msra.gmra.mxu0 %v65_v28  ;;  %206 = vmatmul.bf16.vlgmr.msra.gmra.mxu2 %v194_v30 }
  0x22   :  { %224 = vmatpush.bf16.msrb.mxu0 %v479_v0  ;;  %275 = vmatpush.bf16.msrb.mxu2 %v479_v0 }
  0x23   :  { %237 = vmatpush.bf16.msrb.mxu1 %v484_v1  ;;  %288 = vmatpush.bf16.msrb.mxu3 %v484_v1 }
  0x24   :  { %186 = vmatmul.bf16.vlgmr.msra.gmra.mxu1 %v66_v29  ;;  %219 = vmatmul.bf16.vlgmr.msra.gmra.mxu3 %v195_v31 }
  0x26   :  { %225 = vmatpush.bf16.msrb.mxu0 %v491_v2  ;;  %276 = vmatpush.bf16.msrb.mxu2 %v491_v2 }
  0x27   :  { %238 = vmatpush.bf16.msrb.mxu1 %v496_v3  ;;  %289 = vmatpush.bf16.msrb.mxu3 %v496_v3 }
  0x2a   :  { %226 = vmatpush.bf16.msrb.mxu0 %v505_v4  ;;  %277 = vmatpush.bf16.msrb.mxu2 %v505_v4 }
  0x2b   :  { %239 = vmatpush.bf16.msrb.mxu1 %v510_v5  ;;  %290 = vmatpush.bf16.msrb.mxu3 %v510_v5 }
  0x2e   :  { %227 = vmatpush.bf16.msrb.mxu0 %v525_v8  ;;  %278 = vmatpush.bf16.msrb.mxu2 %v525_v8 }
  0x2f   :  { %240 = vmatpush.bf16.msrb.mxu1 %v530_v9  ;;  %291 = vmatpush.bf16.msrb.mxu3 %v530_v9 }
  0x32   :  { %228 = vmatpush.bf16.msrb.mxu0 %v539_v11  ;;  %279 = vmatpush.bf16.msrb.mxu2 %v539_v11 }
  0x33   :  { %241 = vmatpush.bf16.msrb.mxu1 %v544_v12  ;;  %292 = vmatpush.bf16.msrb.mxu3 %v544_v12 }
  0x36   :  { %229 = vmatpush.bf16.msrb.mxu0 %v553_v15  ;;  %280 = vmatpush.bf16.msrb.mxu2 %v553_v15 }
  0x37   :  { %242 = vmatpush.bf16.msrb.mxu1 %v558_v16  ;;  %293 = vmatpush.bf16.msrb.mxu3 %v558_v16 }
  0x3a   :  { %230 = vmatpush.bf16.msrb.mxu0 %v571_v19  ;;  %281 = vmatpush.bf16.msrb.mxu2 %v571_v19 }
  0x3b   :  { %243 = vmatpush.bf16.msrb.mxu1 %v576_v20  ;;  %294 = vmatpush.bf16.msrb.mxu3 %v576_v20 }
  0x3e   :  { %231 = vmatpush.bf16.msrb.mxu0 %v589_v22  ;;  %282 = vmatpush.bf16.msrb.mxu2 %v589_v22 }
  0x3f   :  { %244 = vmatpush.bf16.msrb.mxu1 %v594_v23  ;;  %295 = vmatpush.bf16.msrb.mxu3 %v594_v23 }
  0x41   :  { %232 = vmatmul.bf16.vlgmr.msrb.gmra.mxu0 %v60_v46  ;;  %283 = vmatmul.bf16.vlgmr.msrb.gmra.mxu2 %v271_v48 }
  0x42   :  { %308 = vmatpush.bf16.msra.mxu0 %v479_v0  ;;  %334 = vmatpush.bf16.msra.mxu2 %v479_v0 }
  0x43   :  { %321 = vmatpush.bf16.msra.mxu1 %v484_v1  ;;  %347 = vmatpush.bf16.msra.mxu3 %v484_v1 }
  0x44   :  { %245 = vmatmul.bf16.vlgmr.msrb.gmra.mxu1 %v61_v47  ;;  %296 = vmatmul.bf16.vlgmr.msrb.gmra.mxu3 %v272_v49 }
  0x46   :  { %309 = vmatpush.bf16.msra.mxu0 %v491_v2  ;;  %335 = vmatpush.bf16.msra.mxu2 %v491_v2 }
  0x47   :  { %322 = vmatpush.bf16.msra.mxu1 %v496_v3  ;;  %348 = vmatpush.bf16.msra.mxu3 %v496_v3 }
  0x4a   :  { %310 = vmatpush.bf16.msra.mxu0 %v505_v4  ;;  %336 = vmatpush.bf16.msra.mxu2 %v505_v4 }
  0x4b   :  { %323 = vmatpush.bf16.msra.mxu1 %v510_v5  ;;  %349 = vmatpush.bf16.msra.mxu3 %v510_v5 }
  0x4e   :  { %311 = vmatpush.bf16.msra.mxu0 %v525_v8  ;;  %337 = vmatpush.bf16.msra.mxu2 %v525_v8 }
  0x4f   :  { %324 = vmatpush.bf16.msra.mxu1 %v530_v9  ;;  %350 = vmatpush.bf16.msra.mxu3 %v530_v9 }
  0x52   :  { %312 = vmatpush.bf16.msra.mxu0 %v539_v11  ;;  %338 = vmatpush.bf16.msra.mxu2 %v539_v11 }
  0x53   :  { %325 = vmatpush.bf16.msra.mxu1 %v544_v12  ;;  %351 = vmatpush.bf16.msra.mxu3 %v544_v12 }
  0x56   :  { %313 = vmatpush.bf16.msra.mxu0 %v553_v15  ;;  %339 = vmatpush.bf16.msra.mxu2 %v553_v15 }
  0x57   :  { %326 = vmatpush.bf16.msra.mxu1 %v558_v16  ;;  %352 = vmatpush.bf16.msra.mxu3 %v558_v16 }
  0x5a   :  { %314 = vmatpush.bf16.msra.mxu0 %v571_v19  ;;  %340 = vmatpush.bf16.msra.mxu2 %v571_v19 }
  0x5b   :  { %327 = vmatpush.bf16.msra.mxu1 %v576_v20  ;;  %353 = vmatpush.bf16.msra.mxu3 %v576_v20 }
  0x5e   :  { %315 = vmatpush.bf16.msra.mxu0 %v589_v22  ;;  %341 = vmatpush.bf16.msra.mxu2 %v589_v22 }
  0x5f   :  { %328 = vmatpush.bf16.msra.mxu1 %v594_v23  ;;  %354 = vmatpush.bf16.msra.mxu3 %v594_v23 }
  0x61   :  { %316 = vmatmul.bf16.vlgmr.msra.gmra.mxu0 %v304_v56  ;;  %342 = vmatmul.bf16.vlgmr.msra.gmra.mxu2 %v266_v58 }
  0x62   :  { %329 = vmatmul.bf16.vlgmr.msra.gmra.mxu1 %v305_v57  ;;  %355 = vmatmul.bf16.vlgmr.msra.gmra.mxu3 %v267_v59 }
  0x9e   :  { %v174_v60 = vpop.f32.mrf.mxu0 }
  0xa1   :  { %v187_v61 = vpop.f32.mrf.mxu1 }
  0xa2   :  { %v188_v4 = vadd.f32 %v187_v61, %v174_v60 }
  0xa4   :  { %v207_v62 = vpop.f32.mrf.mxu2 }
  0xa5   :  { %v208_v5 = vadd.f32 %v207_v62, %v188_v4 }
  0xa6   :  { %v176_v0 = vpop.f32.mrf.mxu0 }
  0xa7   :  { %v220_v63 = vpop.f32.mrf.mxu3 }
  0xa8   :  { %v221_v6 = vadd.f32 %v220_v63, %v208_v5 }
  0xa9   :  { %v189_v1 = vpop.f32.mrf.mxu1 }
  0xac   :  { %v209_v2 = vpop.f32.mrf.mxu2 }
  0xaf   :  { %v222_v3 = vpop.f32.mrf.mxu3 }
  0xbe   :  { %v233_v7 = vpop.f32.mrf.mxu0 }
  0xc1   :  { %v246_v8 = vpop.f32.mrf.mxu1 }
  0xc2   :  { %v247_v9 = vadd.f32 %v246_v8, %v233_v7 }
  0xc4   :  { %v250_v10 = vadd.f32 %v247_v9, %v221_v6  ;;  %v284_v12 = vpop.f32.mrf.mxu2 }
  0xc6   :  { %v251_v11 = vmul.f32 0.25, %v250_v10  ;;  %v235_v14 = vpop.f32.mrf.mxu0 }
  0xc7   :  { %v297_v13 = vpop.f32.mrf.mxu3 }
  0xc8   :  { %253 = vst.msk [vmem:[%s695_s3] sm:$0xff] %vm252_vm0, %v251_v11  ;;  %v298_v20 = vadd.f32 %v297_v13, %v284_v12 }
  0xc9   :  { %v248_v15 = vpop.f32.mrf.mxu1 }
  0xcc   :  { %v286_v16 = vpop.f32.mrf.mxu2 }
  0xcf   :  { %v299_v17 = vpop.f32.mrf.mxu3 }
  0xde   :  { %v317_v18 = vpop.f32.mrf.mxu0 }
  0xdf   :  { %v330_v19 = vpop.f32.mrf.mxu1  ;;  %v318_v21 = vadd.f32 %v317_v18, %v298_v20 }
  0xe1   :  { %v331_v24 = vadd.f32 %v330_v19, %v318_v21 }
  0xe4   :  { %v343_v22 = vpop.f32.mrf.mxu2 }
  0xe5   :  { %v356_v23 = vpop.f32.mrf.mxu3 }
  0xe6   :  { %v357_v25 = vadd.f32 %v356_v23, %v343_v22  ;;  %v319_v26 = vpop.f32.mrf.mxu0 }
  0xe7   :  { %v332_v27 = vpop.f32.mrf.mxu1 }
  0xe8   :  { %v360_v28 = vadd.f32 %v357_v25, %v331_v24 }
  0xea   :  { %v361_v29 = vmul.f32 0.25, %v360_v28 }
  0xec   :  { %362 = vst.msk [vmem:[%s696_s4] sm:$0xff] %vm252_vm0, %v361_v29  ;;  %v345_v30 = vpop.f32.mrf.mxu2 }
  0xed   :  { %v358_v31 = vpop.f32.mrf.mxu3 }

</bundles_post_ra>
